<compile_context>
chip_gen: v6e
topology: v6e:2x2x1
jax: 0.10.0
libtpu: 0.0.40
codegen_flags: <defaults>
</compile_context>

<pallas_src>
import jax
import jax.numpy as jnp
from jax import lax
from jax.experimental import pallas as pl
from jax.experimental.pallas import tpu as pltpu


def rnn_kernel(xpad_ref, h0_ref, c0_ref,
               wx_ref, bpre_ref, wf_ref,
               wout_ref, bout_ref,
               y_ref, hn_ref, cn_ref,
               hs_ref):
    """Whole-sequence wavefront-fused 2-layer LSTM + Linear + LogSoftmax."""
    Sp1 = xpad_ref.shape[0]          # S + 1 wavefront steps
    S = Sp1 - 1
    H2 = h0_ref.shape[1]             # 2 * hidden_size (fused [h0|h1] lanes)
    H = H2 // 2

    # ---- prologue (off the serial chain): hoisted input projection ---------
    # pre[w] carries x_w @ W_ih_l0^T + b0 in the layer-0 gate columns and the
    # layer-1 bias b1 in the layer-1 gate columns.  Row S (from the zero-padded
    # x row) carries biases only and feeds the peeled epilogue step.
    pre = jnp.dot(xpad_ref[...], wx_ref[...],
                  preferred_element_type=jnp.float32) + bpre_ref[...]   # (S+1, 8H)

    wf = wf_ref[...]                                                    # (2H, 8H)

    # lane masks for the peeled boundary steps (VPU select, no lane movement)
    lane = lax.broadcasted_iota(jnp.int32, (1, H2), 1)
    mask_l0 = lane < H               # layer-0 half of the fused state
    mask_l1 = lane >= H              # layer-1 half

    # fused state: h_state = [h0_{w-1} | h1_{w-2}],  c_state = [c0 | c1]
    h_state = h0_ref[...]
    c_state = c0_ref[...]

    # ---- wavefront recurrence: ONE dependent matmul per step ---------------
    # step w computes layer-0 @ t=w (if w<S) and layer-1 @ t=w-1 (if w>=1).
    for w in range(S + 1):           # fully unrolled: S is a small static constant
        gates = pre[w:w + 1, :] + jnp.dot(h_state, wf,
                                          preferred_element_type=jnp.float32)
        # two full-width EUP pushes cover all 8 gate blocks of BOTH cells
        sg = jax.nn.sigmoid(gates)                       # (1, 8H)
        th = jnp.tanh(gates)                             # (1, 8H)
        i_b = sg[:, 0 * H2:1 * H2]                       # [i0 | i1]
        f_b = sg[:, 1 * H2:2 * H2]                       # [f0 | f1]
        g_b = th[:, 2 * H2:3 * H2]                       # [g0 | g1]
        o_b = sg[:, 3 * H2:4 * H2]                       # [o0 | o1]

        c_new = f_b * c_state + i_b * g_b                # both cells at once
        h_new = o_b * jnp.tanh(c_new)

        if w == 0:                   # peeled prologue: only layer-0 half valid
            c_state = jnp.where(mask_l0, c_new, c_state)
            h_state = jnp.where(mask_l0, h_new, h_state)
        elif w == S:                 # peeled epilogue: only layer-1 half valid
            c_state = jnp.where(mask_l1, c_new, c_state)
            h_state = jnp.where(mask_l1, h_new, h_state)
        else:                        # steady state: full-width update
            c_state = c_new
            h_state = h_new

        if w >= 1:                   # layer-1 hidden for t = w-1
            hs_ref[w - 1:w, :] = h_state

    # ---- deferred output head (epilogue, off the serial chain) -------------
    # wout_ref has its top H rows zeroed, so the h0 half of the stored fused
    # state contributes nothing -> no per-row lane slicing needed.
    h_all = hs_ref[...]                                               # (S, 2H)
    logits = jnp.dot(h_all, wout_ref[...],
                     preferred_element_type=jnp.float32) + bout_ref[...]  # (S, O)
    # Dropout(eval) == identity.  LogSoftmax over the feature dim (dim=1).
    m = jnp.max(logits, axis=-1, keepdims=True)
    z = logits - m
    lse = jnp.log(jnp.sum(jnp.exp(z), axis=-1, keepdims=True))
    y_ref[...] = (z - lse).astype(y_ref.dtype)
    # TODO(synk): for a real vocabulary, pad O to a multiple of 128 so this
    # store is lane-dense (negligible at O=32).

    hn_ref[...] = h_state.astype(hn_ref.dtype)            # [h0_last | h1_last]
    cn_ref[...] = c_state.astype(cn_ref.dtype)            # [c0_last | c1_last]


def _interleave_gate_blocks(a, b, H):
    """Interleave two (rows, 4H) gate matrices into (rows, 8H) laid out as
    [a_i b_i a_f b_f a_g b_g a_o b_o] (PyTorch gate order i,f,g,o)."""
    r = a.shape[0]
    return jnp.stack([a.reshape(r, 4, H), b.reshape(r, 4, H)],
                     axis=2).reshape(r, 8 * H)


def rnn_forward(x, hidden, params):
    """Wrapper: builds the fused/interleaved weight layout and calls the kernel."""
    h0, c0 = hidden
    S, I = x.shape
    L, H = h0.shape
    assert L == 2, "kernel is specialized to num_layers=2"
    O = params["w_out"].shape[0]
    f32 = jnp.float32

    # fold the two LSTM bias vectors per layer
    b0 = (params["b_ih_l0"] + params["b_hh_l0"]).reshape(1, 4 * H)
    b1 = (params["b_ih_l1"] + params["b_hh_l1"]).reshape(1, 4 * H)

    # hoisted input-projection weight in the fused gate layout:
    #   layer-0 gate columns = W_ih_l0^T, layer-1 gate columns = 0 (bias only)
    wx = _interleave_gate_blocks(params["w_ih_l0"].T.astype(f32),
                                 jnp.zeros((I, 4 * H), f32), H)          # (I, 8H)
    bpre = _interleave_gate_blocks(b0, b1, H)                            # (1, 8H)

    # fused wavefront recurrence weight (2H, 8H):
    #   rows 0:H  (h0 lanes): layer-0 cols = W_hh_l0^T, layer-1 cols = W_ih_l1^T
    #   rows H:2H (h1 lanes): layer-0 cols = 0,         layer-1 cols = W_hh_l1^T
    top = _interleave_gate_blocks(params["w_hh_l0"].T, params["w_ih_l1"].T, H)
    bot = _interleave_gate_blocks(jnp.zeros((H, 4 * H), f32), params["w_hh_l1"].T, H)
    wf = jnp.concatenate([top, bot], axis=0)                             # (2H, 8H)

    # output head: zero-pad the h0 half so the fused state multiplies directly
    wout = jnp.concatenate([jnp.zeros((H, O), f32), params["w_out"].T], axis=0)  # (2H, O)
    bout = params["b_out"].reshape(1, O)

    # one zero row appended -> epilogue wavefront step sees biases only
    xpad = jnp.concatenate([x, jnp.zeros((1, I), f32)], axis=0)          # (S+1, I)

    # fused [layer0 | layer1] initial-state lane vectors
    h0f = h0.reshape(1, 2 * H)
    c0f = c0.reshape(1, 2 * H)

    vmem = lambda: pl.BlockSpec(memory_space=pltpu.MemorySpace.VMEM)
    y, hn, cn = pl.pallas_call(
        rnn_kernel,
        out_shape=(
            jax.ShapeDtypeStruct((S, O), f32),
            jax.ShapeDtypeStruct((1, 2 * H), f32),
            jax.ShapeDtypeStruct((1, 2 * H), f32),
        ),
        in_specs=[vmem() for _ in range(8)],
        out_specs=(vmem(), vmem(), vmem()),
        scratch_shapes=[pltpu.VMEM((S, 2 * H), f32)],
    )(xpad, h0f, c0f, wx, bpre, wf, wout, bout)

    return y, (hn.reshape(L, H), cn.reshape(L, H))


def init_params(key, input_size, hidden_size, output_size):
    """Deterministic synthetic parameters matching nn.LSTM / nn.Linear shapes."""
    H = hidden_size
    k_lstm = 1.0 / jnp.sqrt(jnp.float32(H))
    k_lin = 1.0 / jnp.sqrt(jnp.float32(H))
    keys = jax.random.split(key, 10)
    u = lambda k, shape, lim: jax.random.uniform(k, shape, jnp.float32, -lim, lim)
    return {
        "w_ih_l0": u(keys[0], (4 * H, input_size), k_lstm),
        "w_hh_l0": u(keys[1], (4 * H, H), k_lstm),
        "b_ih_l0": u(keys[2], (4 * H,), k_lstm),
        "b_hh_l0": u(keys[3], (4 * H,), k_lstm),
        "w_ih_l1": u(keys[4], (4 * H, H), k_lstm),
        "w_hh_l1": u(keys[5], (4 * H, H), k_lstm),
        "b_ih_l1": u(keys[6], (4 * H,), k_lstm),
        "b_hh_l1": u(keys[7], (4 * H,), k_lstm),
        "w_out": u(keys[8], (output_size, H), 1.0),   # out.weight.data.uniform_(-1, 1)
        "b_out": u(keys[9], (output_size,), k_lin),
    }


def _reference(x, hidden, params):
    """Pure-JAX reference of the same forward pass (sanity check)."""
    h, c = hidden

    def cell(x_t, h_t, c_t, w_ih, w_hh, b_ih, b_hh):
        g = x_t @ w_ih.T + h_t @ w_hh.T + b_ih + b_hh
        i, f, gg, o = jnp.split(g, 4, axis=-1)
        c_n = jax.nn.sigmoid(f) * c_t + jax.nn.sigmoid(i) * jnp.tanh(gg)
        return jax.nn.sigmoid(o) * jnp.tanh(c_n), c_n

    ys = []
    h0, h1 = h[0], h[1]
    c0, c1 = c[0], c[1]
    for t in range(x.shape[0]):
        h0, c0 = cell(x[t], h0, c0, params["w_ih_l0"], params["w_hh_l0"],
                      params["b_ih_l0"], params["b_hh_l0"])
        h1, c1 = cell(h0, h1, c1, params["w_ih_l1"], params["w_hh_l1"],
                      params["b_ih_l1"], params["b_hh_l1"])
        ys.append(h1 @ params["w_out"].T + params["b_out"])
    logits = jnp.stack(ys)
    return (jax.nn.log_softmax(logits, axis=1),
            (jnp.stack([h0, h1]), jnp.stack([c0, c1])))


if __name__ == "__main__":
    SEQ, IN, HID, OUT, LAYERS = 8, 16, 32, 32, 2

    root = jax.random.PRNGKey(0)
    kx, kp = jax.random.split(root)
    x = jax.random.normal(kx, (SEQ, IN), jnp.float32)
    hidden = (jnp.zeros((LAYERS, HID), jnp.float32),   # initHidden()
              jnp.zeros((LAYERS, HID), jnp.float32))
    params = init_params(kp, IN, HID, OUT)

    y, (hn, cn) = jax.block_until_ready(rnn_forward(x, hidden, params))

    y_ref, (hn_ref, cn_ref) = _reference(x, hidden, params)
    assert jnp.allclose(y, y_ref, atol=1e-4), "log-softmax output mismatch"
    assert jnp.allclose(hn, hn_ref, atol=1e-4), "h_n mismatch"
    assert jnp.allclose(cn, cn_ref, atol=1e-4), "c_n mismatch"

    print("KERNEL_OK")
</pallas_src>

<mosaic_0001>
module attributes {stable_mosaic.version = 11 : i64} {
  func.func @rnn_kernel(%arg0: memref<9x16xf32, #tpu.memory_space<vmem>>, %arg1: memref<1x64xf32, #tpu.memory_space<vmem>>, %arg2: memref<1x64xf32, #tpu.memory_space<vmem>>, %arg3: memref<16x256xf32, #tpu.memory_space<vmem>>, %arg4: memref<1x256xf32, #tpu.memory_space<vmem>>, %arg5: memref<64x256xf32, #tpu.memory_space<vmem>>, %arg6: memref<64x32xf32, #tpu.memory_space<vmem>>, %arg7: memref<1x32xf32, #tpu.memory_space<vmem>>, %arg8: memref<8x32xf32, #tpu.memory_space<vmem>>, %arg9: memref<1x64xf32, #tpu.memory_space<vmem>>, %arg10: memref<1x64xf32, #tpu.memory_space<vmem>>, %arg11: memref<8x64xf32, #tpu.memory_space<vmem>>) attributes {dimension_semantics = [], scalar_prefetch = 0 : i64, scratch_operands = 1 : i64, tpu.core_type = #tpu.core_type<tc>} {
    %c0 = arith.constant 0 : index
    %c0_0 = arith.constant 0 : index
    %0 = vector.load %arg0[%c0, %c0_0] : memref<9x16xf32, #tpu.memory_space<vmem>>, vector<9x16xf32>
    %c0_1 = arith.constant 0 : index
    %c0_2 = arith.constant 0 : index
    %1 = vector.load %arg3[%c0_1, %c0_2] : memref<16x256xf32, #tpu.memory_space<vmem>>, vector<16x256xf32>
    %cst = arith.constant dense<0.000000e+00> : vector<9x256xf32>
    %2 = tpu.matmul %0, %1, %cst {dimension_numbers = #tpu.dot_dimension_numbers<[1], [0], [0], [1], [0, 0, 1, 1], [], []>} : vector<9x16xf32>, vector<16x256xf32>, vector<9x256xf32> -> vector<9x256xf32>
    %c0_3 = arith.constant 0 : index
    %c0_4 = arith.constant 0 : index
    %3 = vector.load %arg4[%c0_3, %c0_4] : memref<1x256xf32, #tpu.memory_space<vmem>>, vector<1x256xf32>
    %4 = vector.broadcast %3 : vector<1x256xf32> to vector<9x256xf32>
    %5 = arith.addf %2, %4 : vector<9x256xf32>
    %c0_5 = arith.constant 0 : index
    %c0_6 = arith.constant 0 : index
    %6 = vector.load %arg5[%c0_5, %c0_6] : memref<64x256xf32, #tpu.memory_space<vmem>>, vector<64x256xf32>
    %7 = tpu.iota {dimensions = array<i32: 1>} : vector<1x64xi32>
    %c32_i32 = arith.constant 32 : i32
    %8 = vector.broadcast %c32_i32 : i32 to vector<1x64xi32>
    %9 = arith.cmpi slt, %7, %8 : vector<1x64xi32>
    %c32_i32_7 = arith.constant 32 : i32
    %10 = vector.broadcast %c32_i32_7 : i32 to vector<1x64xi32>
    %11 = arith.cmpi sge, %7, %10 : vector<1x64xi32>
    %c0_8 = arith.constant 0 : index
    %c0_9 = arith.constant 0 : index
    %12 = vector.load %arg1[%c0_8, %c0_9] : memref<1x64xf32, #tpu.memory_space<vmem>>, vector<1x64xf32>
    %c0_10 = arith.constant 0 : index
    %c0_11 = arith.constant 0 : index
    %13 = vector.load %arg2[%c0_10, %c0_11] : memref<1x64xf32, #tpu.memory_space<vmem>>, vector<1x64xf32>
    %14 = vector.extract_strided_slice %5 {offsets = [0, 0], sizes = [1, 256], strides = [1, 1]} : vector<9x256xf32> to vector<1x256xf32>
    %cst_12 = arith.constant dense<0.000000e+00> : vector<1x256xf32>
    %15 = tpu.matmul %12, %6, %cst_12 {dimension_numbers = #tpu.dot_dimension_numbers<[1], [0], [0], [1], [0, 0, 1, 1], [], []>} : vector<1x64xf32>, vector<64x256xf32>, vector<1x256xf32> -> vector<1x256xf32>
    %16 = arith.addf %14, %15 : vector<1x256xf32>
    %17 = arith.negf %16 : vector<1x256xf32>
    %18 = math.exp %17 : vector<1x256xf32>
    %cst_13 = arith.constant 1.000000e+00 : f32
    %19 = vector.broadcast %cst_13 : f32 to vector<1x256xf32>
    %20 = arith.addf %19, %18 : vector<1x256xf32>
    %21 = arith.divf %19, %20 : vector<1x256xf32>
    %22 = math.tanh %16 : vector<1x256xf32>
    %23 = vector.extract_strided_slice %21 {offsets = [0, 0], sizes = [1, 64], strides = [1, 1]} : vector<1x256xf32> to vector<1x64xf32>
    %24 = vector.extract_strided_slice %21 {offsets = [0, 64], sizes = [1, 64], strides = [1, 1]} : vector<1x256xf32> to vector<1x64xf32>
    %25 = vector.extract_strided_slice %22 {offsets = [0, 128], sizes = [1, 64], strides = [1, 1]} : vector<1x256xf32> to vector<1x64xf32>
    %26 = vector.extract_strided_slice %21 {offsets = [0, 192], sizes = [1, 64], strides = [1, 1]} : vector<1x256xf32> to vector<1x64xf32>
    %27 = arith.mulf %24, %13 : vector<1x64xf32>
    %28 = arith.mulf %23, %25 : vector<1x64xf32>
    %29 = arith.addf %27, %28 : vector<1x64xf32>
    %30 = math.tanh %29 : vector<1x64xf32>
    %31 = arith.mulf %26, %30 : vector<1x64xf32>
    %32 = arith.select %9, %29, %13 : vector<1x64xi1>, vector<1x64xf32>
    %33 = arith.select %9, %31, %12 : vector<1x64xi1>, vector<1x64xf32>
    %34 = vector.extract_strided_slice %5 {offsets = [1, 0], sizes = [1, 256], strides = [1, 1]} : vector<9x256xf32> to vector<1x256xf32>
    %cst_14 = arith.constant dense<0.000000e+00> : vector<1x256xf32>
    %35 = tpu.matmul %33, %6, %cst_14 {dimension_numbers = #tpu.dot_dimension_numbers<[1], [0], [0], [1], [0, 0, 1, 1], [], []>} : vector<1x64xf32>, vector<64x256xf32>, vector<1x256xf32> -> vector<1x256xf32>
    %36 = arith.addf %34, %35 : vector<1x256xf32>
    %37 = arith.negf %36 : vector<1x256xf32>
    %38 = math.exp %37 : vector<1x256xf32>
    %cst_15 = arith.constant 1.000000e+00 : f32
    %39 = vector.broadcast %cst_15 : f32 to vector<1x256xf32>
    %40 = arith.addf %39, %38 : vector<1x256xf32>
    %41 = arith.divf %39, %40 : vector<1x256xf32>
    %42 = math.tanh %36 : vector<1x256xf32>
    %43 = vector.extract_strided_slice %41 {offsets = [0, 0], sizes = [1, 64], strides = [1, 1]} : vector<1x256xf32> to vector<1x64xf32>
    %44 = vector.extract_strided_slice %41 {offsets = [0, 64], sizes = [1, 64], strides = [1, 1]} : vector<1x256xf32> to vector<1x64xf32>
    %45 = vector.extract_strided_slice %42 {offsets = [0, 128], sizes = [1, 64], strides = [1, 1]} : vector<1x256xf32> to vector<1x64xf32>
    %46 = vector.extract_strided_slice %41 {offsets = [0, 192], sizes = [1, 64], strides = [1, 1]} : vector<1x256xf32> to vector<1x64xf32>
    %47 = arith.mulf %44, %32 : vector<1x64xf32>
    %48 = arith.mulf %43, %45 : vector<1x64xf32>
    %49 = arith.addf %47, %48 : vector<1x64xf32>
    %50 = math.tanh %49 : vector<1x64xf32>
    %51 = arith.mulf %46, %50 : vector<1x64xf32>
    %c0_16 = arith.constant 0 : index
    %c0_17 = arith.constant 0 : index
    %52 = vector.load %arg11[%c0_16, %c0_17] : memref<8x64xf32, #tpu.memory_space<vmem>>, vector<1x64xf32>
    tpu.vector_store %arg11[%c0_16, %c0_17], %51 {strides = array<i32>} : memref<8x64xf32, #tpu.memory_space<vmem>>, vector<1x64xf32>,
    %53 = vector.extract_strided_slice %5 {offsets = [2, 0], sizes = [1, 256], strides = [1, 1]} : vector<9x256xf32> to vector<1x256xf32>
    %cst_18 = arith.constant dense<0.000000e+00> : vector<1x256xf32>
    %54 = tpu.matmul %51, %6, %cst_18 {dimension_numbers = #tpu.dot_dimension_numbers<[1], [0], [0], [1], [0, 0, 1, 1], [], []>} : vector<1x64xf32>, vector<64x256xf32>, vector<1x256xf32> -> vector<1x256xf32>
    %55 = arith.addf %53, %54 : vector<1x256xf32>
    %56 = arith.negf %55 : vector<1x256xf32>
    %57 = math.exp %56 : vector<1x256xf32>
    %cst_19 = arith.constant 1.000000e+00 : f32
    %58 = vector.broadcast %cst_19 : f32 to vector<1x256xf32>
    %59 = arith.addf %58, %57 : vector<1x256xf32>
    %60 = arith.divf %58, %59 : vector<1x256xf32>
    %61 = math.tanh %55 : vector<1x256xf32>
    %62 = vector.extract_strided_slice %60 {offsets = [0, 0], sizes = [1, 64], strides = [1, 1]} : vector<1x256xf32> to vector<1x64xf32>
    %63 = vector.extract_strided_slice %60 {offsets = [0, 64], sizes = [1, 64], strides = [1, 1]} : vector<1x256xf32> to vector<1x64xf32>
    %64 = vector.extract_strided_slice %61 {offsets = [0, 128], sizes = [1, 64], strides = [1, 1]} : vector<1x256xf32> to vector<1x64xf32>
    %65 = vector.extract_strided_slice %60 {offsets = [0, 192], sizes = [1, 64], strides = [1, 1]} : vector<1x256xf32> to vector<1x64xf32>
    %66 = arith.mulf %63, %49 : vector<1x64xf32>
    %67 = arith.mulf %62, %64 : vector<1x64xf32>
    %68 = arith.addf %66, %67 : vector<1x64xf32>
    %69 = math.tanh %68 : vector<1x64xf32>
    %70 = arith.mulf %65, %69 : vector<1x64xf32>
    %c1 = arith.constant 1 : index
    %c0_20 = arith.constant 0 : index
    %71 = vector.load %arg11[%c1, %c0_20] : memref<8x64xf32, #tpu.memory_space<vmem>>, vector<1x64xf32>
    tpu.vector_store %arg11[%c1, %c0_20], %70 {strides = array<i32>} : memref<8x64xf32, #tpu.memory_space<vmem>>, vector<1x64xf32>,
    %72 = vector.extract_strided_slice %5 {offsets = [3, 0], sizes = [1, 256], strides = [1, 1]} : vector<9x256xf32> to vector<1x256xf32>
    %cst_21 = arith.constant dense<0.000000e+00> : vector<1x256xf32>
    %73 = tpu.matmul %70, %6, %cst_21 {dimension_numbers = #tpu.dot_dimension_numbers<[1], [0], [0], [1], [0, 0, 1, 1], [], []>} : vector<1x64xf32>, vector<64x256xf32>, vector<1x256xf32> -> vector<1x256xf32>
    %74 = arith.addf %72, %73 : vector<1x256xf32>
    %75 = arith.negf %74 : vector<1x256xf32>
    %76 = math.exp %75 : vector<1x256xf32>
    %cst_22 = arith.constant 1.000000e+00 : f32
    %77 = vector.broadcast %cst_22 : f32 to vector<1x256xf32>
    %78 = arith.addf %77, %76 : vector<1x256xf32>
    %79 = arith.divf %77, %78 : vector<1x256xf32>
    %80 = math.tanh %74 : vector<1x256xf32>
    %81 = vector.extract_strided_slice %79 {offsets = [0, 0], sizes = [1, 64], strides = [1, 1]} : vector<1x256xf32> to vector<1x64xf32>
    %82 = vector.extract_strided_slice %79 {offsets = [0, 64], sizes = [1, 64], strides = [1, 1]} : vector<1x256xf32> to vector<1x64xf32>
    %83 = vector.extract_strided_slice %80 {offsets = [0, 128], sizes = [1, 64], strides = [1, 1]} : vector<1x256xf32> to vector<1x64xf32>
    %84 = vector.extract_strided_slice %79 {offsets = [0, 192], sizes = [1, 64], strides = [1, 1]} : vector<1x256xf32> to vector<1x64xf32>
    %85 = arith.mulf %82, %68 : vector<1x64xf32>
    %86 = arith.mulf %81, %83 : vector<1x64xf32>
    %87 = arith.addf %85, %86 : vector<1x64xf32>
    %88 = math.tanh %87 : vector<1x64xf32>
    %89 = arith.mulf %84, %88 : vector<1x64xf32>
    %c2 = arith.constant 2 : index
    %c0_23 = arith.constant 0 : index
    %90 = vector.load %arg11[%c2, %c0_23] : memref<8x64xf32, #tpu.memory_space<vmem>>, vector<1x64xf32>
    tpu.vector_store %arg11[%c2, %c0_23], %89 {strides = array<i32>} : memref<8x64xf32, #tpu.memory_space<vmem>>, vector<1x64xf32>,
    %91 = vector.extract_strided_slice %5 {offsets = [4, 0], sizes = [1, 256], strides = [1, 1]} : vector<9x256xf32> to vector<1x256xf32>
    %cst_24 = arith.constant dense<0.000000e+00> : vector<1x256xf32>
    %92 = tpu.matmul %89, %6, %cst_24 {dimension_numbers = #tpu.dot_dimension_numbers<[1], [0], [0], [1], [0, 0, 1, 1], [], []>} : vector<1x64xf32>, vector<64x256xf32>, vector<1x256xf32> -> vector<1x256xf32>
    %93 = arith.addf %91, %92 : vector<1x256xf32>
    %94 = arith.negf %93 : vector<1x256xf32>
    %95 = math.exp %94 : vector<1x256xf32>
    %cst_25 = arith.constant 1.000000e+00 : f32
    %96 = vector.broadcast %cst_25 : f32 to vector<1x256xf32>
    %97 = arith.addf %96, %95 : vector<1x256xf32>
    %98 = arith.divf %96, %97 : vector<1x256xf32>
    %99 = math.tanh %93 : vector<1x256xf32>
    %100 = vector.extract_strided_slice %98 {offsets = [0, 0], sizes = [1, 64], strides = [1, 1]} : vector<1x256xf32> to vector<1x64xf32>
    %101 = vector.extract_strided_slice %98 {offsets = [0, 64], sizes = [1, 64], strides = [1, 1]} : vector<1x256xf32> to vector<1x64xf32>
    %102 = vector.extract_strided_slice %99 {offsets = [0, 128], sizes = [1, 64], strides = [1, 1]} : vector<1x256xf32> to vector<1x64xf32>
    %103 = vector.extract_strided_slice %98 {offsets = [0, 192], sizes = [1, 64], strides = [1, 1]} : vector<1x256xf32> to vector<1x64xf32>
    %104 = arith.mulf %101, %87 : vector<1x64xf32>
    %105 = arith.mulf %100, %102 : vector<1x64xf32>
    %106 = arith.addf %104, %105 : vector<1x64xf32>
    %107 = math.tanh %106 : vector<1x64xf32>
    %108 = arith.mulf %103, %107 : vector<1x64xf32>
    %c3 = arith.constant 3 : index
    %c0_26 = arith.constant 0 : index
    %109 = vector.load %arg11[%c3, %c0_26] : memref<8x64xf32, #tpu.memory_space<vmem>>, vector<1x64xf32>
    tpu.vector_store %arg11[%c3, %c0_26], %108 {strides = array<i32>} : memref<8x64xf32, #tpu.memory_space<vmem>>, vector<1x64xf32>,
    %110 = vector.extract_strided_slice %5 {offsets = [5, 0], sizes = [1, 256], strides = [1, 1]} : vector<9x256xf32> to vector<1x256xf32>
    %cst_27 = arith.constant dense<0.000000e+00> : vector<1x256xf32>
    %111 = tpu.matmul %108, %6, %cst_27 {dimension_numbers = #tpu.dot_dimension_numbers<[1], [0], [0], [1], [0, 0, 1, 1], [], []>} : vector<1x64xf32>, vector<64x256xf32>, vector<1x256xf32> -> vector<1x256xf32>
    %112 = arith.addf %110, %111 : vector<1x256xf32>
    %113 = arith.negf %112 : vector<1x256xf32>
    %114 = math.exp %113 : vector<1x256xf32>
    %cst_28 = arith.constant 1.000000e+00 : f32
    %115 = vector.broadcast %cst_28 : f32 to vector<1x256xf32>
    %116 = arith.addf %115, %114 : vector<1x256xf32>
    %117 = arith.divf %115, %116 : vector<1x256xf32>
    %118 = math.tanh %112 : vector<1x256xf32>
    %119 = vector.extract_strided_slice %117 {offsets = [0, 0], sizes = [1, 64], strides = [1, 1]} : vector<1x256xf32> to vector<1x64xf32>
    %120 = vector.extract_strided_slice %117 {offsets = [0, 64], sizes = [1, 64], strides = [1, 1]} : vector<1x256xf32> to vector<1x64xf32>
    %121 = vector.extract_strided_slice %118 {offsets = [0, 128], sizes = [1, 64], strides = [1, 1]} : vector<1x256xf32> to vector<1x64xf32>
    %122 = vector.extract_strided_slice %117 {offsets = [0, 192], sizes = [1, 64], strides = [1, 1]} : vector<1x256xf32> to vector<1x64xf32>
    %123 = arith.mulf %120, %106 : vector<1x64xf32>
    %124 = arith.mulf %119, %121 : vector<1x64xf32>
    %125 = arith.addf %123, %124 : vector<1x64xf32>
    %126 = math.tanh %125 : vector<1x64xf32>
    %127 = arith.mulf %122, %126 : vector<1x64xf32>
    %c4 = arith.constant 4 : index
    %c0_29 = arith.constant 0 : index
    %128 = vector.load %arg11[%c4, %c0_29] : memref<8x64xf32, #tpu.memory_space<vmem>>, vector<1x64xf32>
    tpu.vector_store %arg11[%c4, %c0_29], %127 {strides = array<i32>} : memref<8x64xf32, #tpu.memory_space<vmem>>, vector<1x64xf32>,
    %129 = vector.extract_strided_slice %5 {offsets = [6, 0], sizes = [1, 256], strides = [1, 1]} : vector<9x256xf32> to vector<1x256xf32>
    %cst_30 = arith.constant dense<0.000000e+00> : vector<1x256xf32>
    %130 = tpu.matmul %127, %6, %cst_30 {dimension_numbers = #tpu.dot_dimension_numbers<[1], [0], [0], [1], [0, 0, 1, 1], [], []>} : vector<1x64xf32>, vector<64x256xf32>, vector<1x256xf32> -> vector<1x256xf32>
    %131 = arith.addf %129, %130 : vector<1x256xf32>
    %132 = arith.negf %131 : vector<1x256xf32>
    %133 = math.exp %132 : vector<1x256xf32>
    %cst_31 = arith.constant 1.000000e+00 : f32
    %134 = vector.broadcast %cst_31 : f32 to vector<1x256xf32>
    %135 = arith.addf %134, %133 : vector<1x256xf32>
    %136 = arith.divf %134, %135 : vector<1x256xf32>
    %137 = math.tanh %131 : vector<1x256xf32>
    %138 = vector.extract_strided_slice %136 {offsets = [0, 0], sizes = [1, 64], strides = [1, 1]} : vector<1x256xf32> to vector<1x64xf32>
    %139 = vector.extract_strided_slice %136 {offsets = [0, 64], sizes = [1, 64], strides = [1, 1]} : vector<1x256xf32> to vector<1x64xf32>
    %140 = vector.extract_strided_slice %137 {offsets = [0, 128], sizes = [1, 64], strides = [1, 1]} : vector<1x256xf32> to vector<1x64xf32>
    %141 = vector.extract_strided_slice %136 {offsets = [0, 192], sizes = [1, 64], strides = [1, 1]} : vector<1x256xf32> to vector<1x64xf32>
    %142 = arith.mulf %139, %125 : vector<1x64xf32>
    %143 = arith.mulf %138, %140 : vector<1x64xf32>
    %144 = arith.addf %142, %143 : vector<1x64xf32>
    %145 = math.tanh %144 : vector<1x64xf32>
    %146 = arith.mulf %141, %145 : vector<1x64xf32>
    %c5 = arith.constant 5 : index
    %c0_32 = arith.constant 0 : index
    %147 = vector.load %arg11[%c5, %c0_32] : memref<8x64xf32, #tpu.memory_space<vmem>>, vector<1x64xf32>
    tpu.vector_store %arg11[%c5, %c0_32], %146 {strides = array<i32>} : memref<8x64xf32, #tpu.memory_space<vmem>>, vector<1x64xf32>,
    %148 = vector.extract_strided_slice %5 {offsets = [7, 0], sizes = [1, 256], strides = [1, 1]} : vector<9x256xf32> to vector<1x256xf32>
    %cst_33 = arith.constant dense<0.000000e+00> : vector<1x256xf32>
    %149 = tpu.matmul %146, %6, %cst_33 {dimension_numbers = #tpu.dot_dimension_numbers<[1], [0], [0], [1], [0, 0, 1, 1], [], []>} : vector<1x64xf32>, vector<64x256xf32>, vector<1x256xf32> -> vector<1x256xf32>
    %150 = arith.addf %148, %149 : vector<1x256xf32>
    %151 = arith.negf %150 : vector<1x256xf32>
    %152 = math.exp %151 : vector<1x256xf32>
    %cst_34 = arith.constant 1.000000e+00 : f32
    %153 = vector.broadcast %cst_34 : f32 to vector<1x256xf32>
    %154 = arith.addf %153, %152 : vector<1x256xf32>
    %155 = arith.divf %153, %154 : vector<1x256xf32>
    %156 = math.tanh %150 : vector<1x256xf32>
    %157 = vector.extract_strided_slice %155 {offsets = [0, 0], sizes = [1, 64], strides = [1, 1]} : vector<1x256xf32> to vector<1x64xf32>
    %158 = vector.extract_strided_slice %155 {offsets = [0, 64], sizes = [1, 64], strides = [1, 1]} : vector<1x256xf32> to vector<1x64xf32>
    %159 = vector.extract_strided_slice %156 {offsets = [0, 128], sizes = [1, 64], strides = [1, 1]} : vector<1x256xf32> to vector<1x64xf32>
    %160 = vector.extract_strided_slice %155 {offsets = [0, 192], sizes = [1, 64], strides = [1, 1]} : vector<1x256xf32> to vector<1x64xf32>
    %161 = arith.mulf %158, %144 : vector<1x64xf32>
    %162 = arith.mulf %157, %159 : vector<1x64xf32>
    %163 = arith.addf %161, %162 : vector<1x64xf32>
    %164 = math.tanh %163 : vector<1x64xf32>
    %165 = arith.mulf %160, %164 : vector<1x64xf32>
    %c6 = arith.constant 6 : index
    %c0_35 = arith.constant 0 : index
    %166 = vector.load %arg11[%c6, %c0_35] : memref<8x64xf32, #tpu.memory_space<vmem>>, vector<1x64xf32>
    tpu.vector_store %arg11[%c6, %c0_35], %165 {strides = array<i32>} : memref<8x64xf32, #tpu.memory_space<vmem>>, vector<1x64xf32>,
    %167 = vector.extract_strided_slice %5 {offsets = [8, 0], sizes = [1, 256], strides = [1, 1]} : vector<9x256xf32> to vector<1x256xf32>
    %cst_36 = arith.constant dense<0.000000e+00> : vector<1x256xf32>
    %168 = tpu.matmul %165, %6, %cst_36 {dimension_numbers = #tpu.dot_dimension_numbers<[1], [0], [0], [1], [0, 0, 1, 1], [], []>} : vector<1x64xf32>, vector<64x256xf32>, vector<1x256xf32> -> vector<1x256xf32>
    %169 = arith.addf %167, %168 : vector<1x256xf32>
    %170 = arith.negf %169 : vector<1x256xf32>
    %171 = math.exp %170 : vector<1x256xf32>
    %cst_37 = arith.constant 1.000000e+00 : f32
    %172 = vector.broadcast %cst_37 : f32 to vector<1x256xf32>
    %173 = arith.addf %172, %171 : vector<1x256xf32>
    %174 = arith.divf %172, %173 : vector<1x256xf32>
    %175 = math.tanh %169 : vector<1x256xf32>
    %176 = vector.extract_strided_slice %174 {offsets = [0, 0], sizes = [1, 64], strides = [1, 1]} : vector<1x256xf32> to vector<1x64xf32>
    %177 = vector.extract_strided_slice %174 {offsets = [0, 64], sizes = [1, 64], strides = [1, 1]} : vector<1x256xf32> to vector<1x64xf32>
    %178 = vector.extract_strided_slice %175 {offsets = [0, 128], sizes = [1, 64], strides = [1, 1]} : vector<1x256xf32> to vector<1x64xf32>
    %179 = vector.extract_strided_slice %174 {offsets = [0, 192], sizes = [1, 64], strides = [1, 1]} : vector<1x256xf32> to vector<1x64xf32>
    %180 = arith.mulf %177, %163 : vector<1x64xf32>
    %181 = arith.mulf %176, %178 : vector<1x64xf32>
    %182 = arith.addf %180, %181 : vector<1x64xf32>
    %183 = math.tanh %182 : vector<1x64xf32>
    %184 = arith.mulf %179, %183 : vector<1x64xf32>
    %185 = arith.select %11, %182, %163 : vector<1x64xi1>, vector<1x64xf32>
    %186 = arith.select %11, %184, %165 : vector<1x64xi1>, vector<1x64xf32>
    %c7 = arith.constant 7 : index
    %c0_38 = arith.constant 0 : index
    %187 = vector.load %arg11[%c7, %c0_38] : memref<8x64xf32, #tpu.memory_space<vmem>>, vector<1x64xf32>
    tpu.vector_store %arg11[%c7, %c0_38], %186 {strides = array<i32>} : memref<8x64xf32, #tpu.memory_space<vmem>>, vector<1x64xf32>,
    %c0_39 = arith.constant 0 : index
    %c0_40 = arith.constant 0 : index
    %188 = vector.load %arg11[%c0_39, %c0_40] : memref<8x64xf32, #tpu.memory_space<vmem>>, vector<8x64xf32>
    %c0_41 = arith.constant 0 : index
    %c0_42 = arith.constant 0 : index
    %189 = vector.load %arg6[%c0_41, %c0_42] : memref<64x32xf32, #tpu.memory_space<vmem>>, vector<64x32xf32>
    %cst_43 = arith.constant dense<0.000000e+00> : vector<8x32xf32>
    %190 = tpu.matmul %188, %189, %cst_43 {dimension_numbers = #tpu.dot_dimension_numbers<[1], [0], [0], [1], [0, 0, 1, 1], [], []>} : vector<8x64xf32>, vector<64x32xf32>, vector<8x32xf32> -> vector<8x32xf32>
    %c0_44 = arith.constant 0 : index
    %c0_45 = arith.constant 0 : index
    %191 = vector.load %arg7[%c0_44, %c0_45] : memref<1x32xf32, #tpu.memory_space<vmem>>, vector<1x32xf32>
    %192 = vector.broadcast %191 : vector<1x32xf32> to vector<8x32xf32>
    %193 = arith.addf %190, %192 : vector<8x32xf32>
    %cst_46 = arith.constant dense<0xFF800000> : vector<8xf32>
    %194 = vector.multi_reduction <maximumf>, %193, %cst_46 [1] : vector<8x32xf32> to vector<8xf32>
    %195 = vector.shape_cast %194 : vector<8xf32> to vector<8x1xf32>
    %196 = vector.broadcast %195 : vector<8x1xf32> to vector<8x32xf32>
    %197 = arith.subf %193, %196 : vector<8x32xf32>
    %198 = math.exp %197 : vector<8x32xf32>
    %cst_47 = arith.constant dense<0.000000e+00> : vector<8xf32>
    %199 = vector.multi_reduction <add>, %198, %cst_47 [1] : vector<8x32xf32> to vector<8xf32>
    %200 = vector.shape_cast %199 : vector<8xf32> to vector<8x1xf32>
    %201 = math.log %200 : vector<8x1xf32>
    %202 = vector.broadcast %201 : vector<8x1xf32> to vector<8x32xf32>
    %203 = arith.subf %197, %202 : vector<8x32xf32>
    %c0_48 = arith.constant 0 : index
    %c0_49 = arith.constant 0 : index
    %204 = vector.load %arg8[%c0_48, %c0_49] : memref<8x32xf32, #tpu.memory_space<vmem>>, vector<8x32xf32>
    tpu.vector_store %arg8[%c0_48, %c0_49], %203 {strides = array<i32>} : memref<8x32xf32, #tpu.memory_space<vmem>>, vector<8x32xf32>,
    %c0_50 = arith.constant 0 : index
    %c0_51 = arith.constant 0 : index
    %205 = vector.load %arg9[%c0_50, %c0_51] : memref<1x64xf32, #tpu.memory_space<vmem>>, vector<1x64xf32>
    tpu.vector_store %arg9[%c0_50, %c0_51], %186 {strides = array<i32>} : memref<1x64xf32, #tpu.memory_space<vmem>>, vector<1x64xf32>,
    %c0_52 = arith.constant 0 : index
    %c0_53 = arith.constant 0 : index
    %206 = vector.load %arg10[%c0_52, %c0_53] : memref<1x64xf32, #tpu.memory_space<vmem>>, vector<1x64xf32>
    tpu.vector_store %arg10[%c0_52, %c0_53], %185 {strides = array<i32>} : memref<1x64xf32, #tpu.memory_space<vmem>>, vector<1x64xf32>,
    return
  }
}

</mosaic_0001>

<bundles_post_ra>
// kernel: tpu_custom_call.1
= control target key start
LH: loop header
LB: loop body
LE: loop exit
PB: predicated region body
PF: predicated region fallthrough
CT: control target
= control target key end

     0   :  { %16 = vsyncpa [#allocation4], 0  ;;  %s2096_s0 = inlined_call_operand.vmem [shape: f32[9,16], index: 0, kind: input, shape index: {}]   ;;  %s2097_s1 = inlined_call_operand.vmem [shape: f32[1,64], index: 1, kind: input, shape index: {}]   ;;  %s2098_s2 = inlined_call_operand.vmem [shape: f32[1,64], index: 2, kind: input, shape index: {}]   ;;  %s2099_s3 = inlined_call_operand.vmem [shape: f32[16,256], index: 3, kind: input, shape index: {}]   ;;  %s2100_s4 = inlined_call_operand.vmem [shape: f32[1,256], index: 4, kind: input, shape index: {}]   ;;  %s2101_s5 = inlined_call_operand.hbm [shape: f32[64,256], index: 5, kind: input, shape index: {}]   ;;  %s2102_s6 = inlined_call_operand.vmem [shape: f32[64,32], index: 6, kind: input, shape index: {}]   ;;  %s2103_s7 = inlined_call_operand.vmem [shape: f32[1,32], index: 7, kind: input, shape index: {}]   ;;  %s2104_s8 = inlined_call_operand.hbm [shape: f32[8,32], index: 8, kind: output, shape index: {0}]   ;;  %s2105_s9 = inlined_call_operand.hbm [shape: f32[1,64], index: 9, kind: output, shape index: {1}]   ;;  %s2106_s10 = inlined_call_operand.hbm [shape: f32[1,64], index: 10, kind: output, shape index: {2}]  }
   0x1   :  { %17 = vsyncpa [#allocation5], 0 }
   0x2   :  { %18 = vsyncpa [#allocation8], 0  ;;  %s1626_s13 = smov [#allocation3]  }
   0x3   :  { %s34_s14 = sshll.u32 %s1626_s13, 4  ;;  %s35_s14 = int_to_ptr.vmem [resolvable:$true] %s34_s14 }
   0x4   :  { %s1548_s15 = scalar_lea.vmem %s35_s14, 2048  ;;  %p1553_p1 = scmp.lt.s32.totalorder %s35_s14, %s35_s14 }
   0x5   :  { %p1549_p0 = scmp.ne.s32.totalorder %s35_s14, %s1548_s15  ;;  %p1554_p2 = scmp.lt.s32.totalorder %s1548_s15, %s1548_s15 }
   0x7   :  { %p1555_p3 = por %p1554_p2, %p1553_p1 }
   0x9   :  { %p1556_p4 = pnand %p1555_p3, %p1549_p0 }
   0xb   :  { %1559 = shalt.err (!%p1556_p4)
}
   0xc   :  { %s1627_s16 = smov 256   ;;  %s1628_s17 = smov 16  }
   0xd   :  { %40 = dma.hbm_to_vmem [thread:$0]  %s2101_s5, 2048, %s35_s14, [#allocation4], %s1627_s16, %s1627_s16, %s1628_s17  }
   0xe   :  { %1620 = dma.done.wait [#allocation4], 2048  }
   0xf   :  { %1621 = vsyncadd [#allocation4], 4294965248  ;;  %v1629_v0 = vmov 0.0   ;;  %v56_v1 = vlaneseq  ;;  %v1695_v2 = vld [vmem:[#allocation3 + $0x78] sm:$0xff]  ;;  %v1697_v3 = vld [vmem:[#allocation3 + $0x70] sm:$0xff]  ;;  %vm66_vm0 = vcmask 130048  }
  0x10   :  { %137 = vmatprep.mubr.f32.mxu0 %v1629_v0  ;;  %240 = vmatprep.mubr.f32.mxu1 %v1629_v0  ;;  %v1699_v4 = vld [vmem:[#allocation3 + $0x68] sm:$0xff]  ;;  %v1705_v6 = vld [vmem:[#allocation3 + $0x60] sm:$0xff]  ;;  %v1708_v7 = vld [vmem:[#allocation3 + $0x58] sm:$0xff]  ;;  %vm172_vm1 = vcmask 523264   ;;  %vm517_vm3 = vcmask 518146   ;;  %vm747_vm4 = vcmask 520196  }
  0x11   :  { %v1702_v5 = vshrl.u32 %v56_v1, 7  ;;  %192 = vmatprep.subr.mxu1 %v1695_v2  ;;  %v53_v8 = vld [vmem:[%s2099_s3 + $0x18] sm:$0xff]  ;;  %v52_v10 = vld [vmem:[%s2099_s3 + $0x10] sm:$0xff]  ;;  %v51_v12 = vld [vmem:[%s2099_s3 + $0x8] sm:$0xff]  ;;  %v1842_v57 = vand.u32 127, %v56_v1  ;;  %vm402_vm5 = vcmask 517121  }
  0x12   :  { %193 = vmatpush1.msra.mxu1 %v1697_v3  ;;  %v1714_v9 = vld [vmem:[#allocation3 + $0x50] sm:$0xff]  ;;  %101 = vmatprep.subr.mxu0 %v53_v8  ;;  %v1720_v11 = vld [vmem:[#allocation3 + $0x48] sm:$0xff]  ;;  %v50_v13 = vld [vmem:[%s2099_s3] sm:$0xff]  ;;  %vm632_vm6 = vcmask 519171   ;;  %vm862_vm7 = vcmask 521221   ;;  %vm1631_vm8 = vmmov 0  }
  0x13   :  { %194 = vmatprep.subr.mxu1 %v1699_v4  ;;  %102 = vmatpush1.msra.mxu0 %v52_v10  ;;  %v58_v14 = vsub.s32 0, %v1702_v5  ;;  %v1730_v15 = vld [vmem:[#allocation3 + $0x40] sm:$0xff]  ;;  %v48_v16 = vld [vmem:[%s2096_s0] sm:$0xff]  ;;  %v1739_v18 = vld [vmem:[#allocation3 + $0x30] sm:$0xff]  ;;  %v62_v35 = vsub.s32 1, %v1702_v5  ;;  %vm168_vm2 = vcmp.lt.s32.totalorder %v1842_v57, 32 }
  0x14   :  { %195 = vmatpush1.msra.mxu1 %v1705_v6  ;;  %103 = vmatprep.subr.mxu0 %v51_v12  ;;  %v1736_v17 = vld [vmem:[#allocation3 + $0x38] sm:$0xff]  ;;  %v1748_v20 = vld [vmem:[#allocation3 + $0x28] sm:$0xff]  ;;  %v1755_v22 = vld [vmem:[#allocation3 + $0x20] sm:$0xff]  ;;  %vm1092_vm9 = vcmask 523271   ;;  %vm169_vm10 = vcmp.ge.s32.totalorder %v1842_v57, 32  ;;  %vm1211_vm11 = vcmask 516096  }
  0x15   :  { %196 = vmatprep.subr.mxu1 %v1708_v7  ;;  %104 = vmatpush1.msra.mxu0 %v50_v13  ;;  %v1745_v19 = vld [vmem:[%s2098_s2] sm:$0x1]  ;;  %s1630_s2 = smov 64   ;;  %v1763_v24 = vld [vmem:[#allocation3 + $0x10] sm:$0xff]  ;;  %v1767_v25 = vld [vmem:[#allocation3 + $0x8] sm:$0xff]  ;;  %vm977_vm12 = vcmask 522246  }
  0x16   :  { %197 = vmatpush1.msra.mxu1 %v1714_v9  ;;  %1360 = vmatmul.mubr.msk.f32.vlgmr.msra.gmra.mxu0 %vm66_vm0, %v48_v16  ;;  %v266_v21 = vrot.slane %v1745_v19, %v58_v14  ;;  %v1759_v23 = vld [vmem:[#allocation3 + $0x18] sm:$0xff]  ;;  %v1771_v26 = vld [vmem:[#allocation3] sm:$0xff]  ;;  %vm1302_vm13 = vcmask 261120  }
  0x17   :  { %198 = vmatprep.subr.mxu1 %v1720_v11  ;;  %308 = vmatprep.subr.mxu0 %v1695_v2  ;;  %v1778_v27 = vld [vmem:[%s2097_s1] sm:$0x1]  ;;  %v49_v46 = vld [vmem:[%s2096_s0 + $0x8] sm:$0x1] }
  0x18   :  { %199 = vmatpush1.msra.mxu1 %v1730_v15  ;;  %309 = vmatpush1.msra.mxu0 %v1697_v3  ;;  %v54_v28 = vld [vmem:[%s2100_s4] sm:$0x3] }
  0x19   :  { %200 = vmatprep.subr.mxu1 %v1736_v17  ;;  %267 = vrot.lane.b32.xlu0 %v266_v21, %s1630_s2  ;;  %v1820_v29 = vrot.slane %v54_v28, %v58_v14  ;;  %v1827_v36 = vrot.slane %v54_v28, %v62_v35 }
  0x1a   :  { %201 = vmatpush1.msra.mxu1 %v1739_v18  ;;  %310 = vmatprep.subr.mxu0 %v1699_v4 }
  0x1b   :  { %202 = vmatprep.subr.mxu1 %v1748_v20  ;;  %311 = vmatpush1.msra.mxu0 %v1705_v6 }
  0x1c   :  { %203 = vmatpush1.msra.mxu1 %v1755_v22  ;;  %312 = vmatprep.subr.mxu0 %v1708_v7 }
  0x1d   :  { %204 = vmatprep.subr.mxu1 %v1759_v23  ;;  %313 = vmatpush1.msra.mxu0 %v1714_v9 }
  0x1e   :  { %205 = vmatpush1.msra.mxu1 %v1763_v24  ;;  %314 = vmatprep.subr.mxu0 %v1720_v11 }
  0x1f   :  { %206 = vmatprep.subr.mxu1 %v1767_v25  ;;  %315 = vmatpush1.msra.mxu0 %v1730_v15 }
  0x20   :  { %207 = vmatpush1.msra.mxu1 %v1771_v26  ;;  %316 = vmatprep.subr.mxu0 %v1736_v17 }
  0x21   :  { %1362 = vmatmul.mubr.msk.f32.vlgmr.msra.gmra.mxu1 %vm172_vm1, %v1778_v27  ;;  %143 = vmatprep.mubr.f32.mxu0 %v1629_v0 }
  0x22   :  { %317 = vmatpush1.msra.mxu0 %v1739_v18  ;;  %425 = vmatprep.subr.mxu1 %v1695_v2 }
  0x23   :  { %318 = vmatprep.subr.mxu0 %v1748_v20  ;;  %426 = vmatpush1.msra.mxu1 %v1697_v3 }
  0x24   :  { %319 = vmatpush1.msra.mxu0 %v1755_v22  ;;  %427 = vmatprep.subr.mxu1 %v1699_v4 }
  0x25   :  { %320 = vmatprep.subr.mxu0 %v1759_v23  ;;  %428 = vmatpush1.msra.mxu1 %v1705_v6 }
  0x26   :  { %321 = vmatpush1.msra.mxu0 %v1763_v24  ;;  %429 = vmatprep.subr.mxu1 %v1708_v7 }
  0x27   :  { %322 = vmatprep.subr.mxu0 %v1767_v25  ;;  %430 = vmatpush1.msra.mxu1 %v1714_v9 }
  0x28   :  { %323 = vmatpush1.msra.mxu0 %v1771_v26  ;;  %431 = vmatprep.subr.mxu1 %v1720_v11 }
  0x29   :  { %473 = vmatprep.mubr.f32.mxu1 %v1629_v0  ;;  %432 = vmatpush1.msra.mxu1 %v1730_v15 }
  0x2a   :  { %540 = vmatprep.subr.mxu0 %v1695_v2  ;;  %433 = vmatprep.subr.mxu1 %v1736_v17 }
  0x2b   :  { %434 = vmatpush1.msra.mxu1 %v1739_v18  ;;  %1361 = vmatmul.mubr.msk.f32.gmra.mxu0 %vm66_vm0, %v49_v46 }
  0x2c   :  { %435 = vmatprep.subr.mxu1 %v1748_v20  ;;  %356 = vmatprep.mubr.f32.mxu0 %v1629_v0 }
  0x2d   :  { %436 = vmatpush1.msra.mxu1 %v1755_v22 }
  0x2e   :  { %437 = vmatprep.subr.mxu1 %v1759_v23 }
  0x2f   :  { %438 = vmatpush1.msra.mxu1 %v1763_v24 }
  0x30   :  { %439 = vmatprep.subr.mxu1 %v1767_v25 }
  0x31   :  { %440 = vmatpush1.msra.mxu1 %v1771_v26 }
  0x32   :  { %655 = vmatprep.subr.mxu1 %v1695_v2 }
  0x8b   :  { %v268_v49 = vpop.permute.xlu0 %267 }
  0xd6   :  { %v139_v30 = vpop.f32.mrf.mxu0 }
  0xd7   :  { %v1823_v31 = vadd.f32 %v139_v30, %v1820_v29 }
  0xd8   :  { %v141_v37 = vpop.f32.mrf.mxu0 }
  0xd9   :  { %v1830_v39 = vadd.f32 %v141_v37, %v1827_v36 }
  0xe1   :  { %v242_v32 = vpop.f32.mrf.mxu1 }
  0xe2   :  { %v247_v33 = vadd.f32 %v242_v32, %v1823_v31 }
  0xe3   :  { %v244_v38 = vpop.f32.mrf.mxu1 }
  0xe4   :  { %v1363_v34 = vmul.f32 -1.442695, %v247_v33  ;;  %v248_v40 = vadd.f32 %v244_v38, %v1830_v39 }
  0xe6   :  { %1428 = vpow2.f32 %v1363_v34  ;;  %v1364_v47 = vmul.f32 -1.442695, %v248_v40 }
  0xe7   :  { %1430 = vtanh.f32 %v248_v40 }
  0xeb   :  { %v1866_v63 = vpop.f32.mrf.mxu0 }
  0xed   :  { %v1868_v1 = vpop.f32.mrf.mxu0 }
  0xf3   :  { %v1429_v41 = vpop.eup %1428 }
  0xf4   :  { %v255_v42 = vadd.f32 1.0, %v1429_v41  ;;  %v1431_v43 = vpop.eup %1430 }
  0xf6   :  { %1432 = vrcp.f32 %v255_v42 }
  0xf7   :  { %1434 = vpow2.f32 %v1364_v47 }
 0x103   :  { %v1433_v44 = vpop.eup %1432 }
 0x104   :  { %v271_v45 = vmul.f32 %v1433_v44, %v1431_v43  ;;  %v1435_v48 = vpop.eup %1434  ;;  %v270_v51 = vmul.f32 %v1433_v44, %v268_v49 }
 0x105   :  { %v256_v50 = vadd.f32 1.0, %v1435_v48 }
 0x106   :  { %273 = vrot.lane.b32.xlu0 %v271_v45, %s1630_s2 }
 0x107   :  { %1436 = vrcp.f32 %v256_v50 }
 0x114   :  { %v1437_v54 = vpop.eup %1436 }
 0x178   :  { %v274_v52 = vpop.permute.xlu0 %273 }
 0x179   :  { %v276_v53 = vadd.f32 %v274_v52, %v270_v51 }
 0x17b   :  { %1438 = vtanh.f32 %v276_v53 }
 0x188   :  { %v1439_v55 = vpop.eup %1438 }
 0x189   :  { %v278_v56 = vmul.f32 %v1439_v55, %v1437_v54 }
 0x18b   :  { %285 = vrot.lane.b32.xlu1 %v278_v56, %s1630_s2 }
 0x18f   :  { %280 = vrot.lane.b32.xlu1 %v276_v53, %s1630_s2 }
 0x1fd   :  { %v286_v58 = vpop.permute.xlu1 %285 }
 0x1fe   :  { %v288_v59 = vsel %vm168_vm2, %v286_v58, %v1778_v27 }
 0x1ff   :  { %1365 = vmatmul.mubr.msk.f32.vlgmr.msra.gmra.mxu0 %vm172_vm1, %v288_v59 }
 0x200   :  { %541 = vmatpush1.msra.mxu0 %v1697_v3  ;;  %588 = vmatprep.mubr.f32.mxu0 %v1629_v0 }
 0x201   :  { %v281_v60 = vpop.permute.xlu1 %280  ;;  %542 = vmatprep.subr.mxu0 %v1699_v4 }
 0x202   :  { %v283_v61 = vsel %vm168_vm2, %v281_v60, %v1745_v19  ;;  %543 = vmatpush1.msra.mxu0 %v1705_v6 }
 0x203   :  { %v385_v62 = vrot.slane %v283_v61, 7  ;;  %544 = vmatprep.subr.mxu0 %v1708_v7 }
 0x204   :  { %545 = vmatpush1.msra.mxu0 %v1714_v9 }
 0x205   :  { %386 = vrot.lane.b32.xlu0 %v385_v62, %s1630_s2  ;;  %546 = vmatprep.subr.mxu0 %v1720_v11 }
 0x206   :  { %547 = vmatpush1.msra.mxu0 %v1730_v15 }
 0x207   :  { %548 = vmatprep.subr.mxu0 %v1736_v17 }
 0x208   :  { %549 = vmatpush1.msra.mxu0 %v1739_v18 }
 0x209   :  { %550 = vmatprep.subr.mxu0 %v1748_v20 }
 0x20a   :  { %551 = vmatpush1.msra.mxu0 %v1755_v22 }
 0x20b   :  { %552 = vmatprep.subr.mxu0 %v1759_v23 }
 0x20c   :  { %553 = vmatpush1.msra.mxu0 %v1763_v24 }
 0x20d   :  { %554 = vmatprep.subr.mxu0 %v1767_v25 }
 0x20e   :  { %555 = vmatpush1.msra.mxu0 %v1771_v26 }
 0x20f   :  { %770 = vmatprep.subr.mxu0 %v1695_v2 }
 0x277   :  { %v387_v34 = vpop.permute.xlu0 %386 }
 0x2bf   :  { %v358_v5 = vpop.f32.mrf.mxu0 }
 0x2c0   :  { %v365_v8 = vrot.slane %v358_v5, 7 }
 0x2c1   :  { %v360_v13 = vpop.f32.mrf.mxu0 }
 0x2c2   :  { %v369_v10 = vadd.f32 %v365_v8, %v1823_v31  ;;  %v366_v14 = vrot.slane %v360_v13, 7 }
 0x2c4   :  { %v1366_v12 = vmul.f32 -1.442695, %v369_v10  ;;  %v370_v16 = vadd.f32 %v366_v14, %v1830_v39 }
 0x2c6   :  { %1440 = vpow2.f32 %v1366_v12  ;;  %v1367_v32 = vmul.f32 -1.442695, %v370_v16 }
 0x2c7   :  { %1442 = vtanh.f32 %v370_v16 }
 0x2d3   :  { %v1441_v19 = vpop.eup %1440 }
 0x2d4   :  { %v377_v21 = vadd.f32 1.0, %v1441_v19  ;;  %v1443_v27 = vpop.eup %1442 }
 0x2d6   :  { %1444 = vrcp.f32 %v377_v21 }
 0x2d7   :  { %1446 = vpow2.f32 %v1367_v32 }
 0x2e3   :  { %v1445_v28 = vpop.eup %1444 }
 0x2e4   :  { %v390_v30 = vmul.f32 %v1445_v28, %v1443_v27  ;;  %v1447_v33 = vpop.eup %1446  ;;  %v389_v37 = vmul.f32 %v1445_v28, %v387_v34 }
 0x2e5   :  { %v378_v35 = vadd.f32 1.0, %v1447_v33 }
 0x2e6   :  { %392 = vrot.lane.b32.xlu1 %v390_v30, %s1630_s2 }
 0x2e7   :  { %1448 = vrcp.f32 %v378_v35 }
 0x2f4   :  { %v1449_v41 = vpop.eup %1448 }
 0x358   :  { %v393_v38 = vpop.permute.xlu1 %392 }
 0x359   :  { %v395_v40 = vadd.f32 %v393_v38, %v389_v37 }
 0x35b   :  { %1450 = vtanh.f32 %v395_v40  ;;  %v502_v56 = vrot.slane %v395_v40, 7 }
 0x368   :  { %v1451_v42 = vpop.eup %1450 }
 0x369   :  { %v1873_v43 = vmul.f32 %v1451_v42, %v1449_v41 }
 0x36b   :  { %v404_v44 = vrot.slane %v1873_v43, 1 }
 0x36d   :  { %405 = vrot.lane.b32.xlu0 %v404_v44, %s1630_s2 }
 0x3df   :  { %v406_v45 = vpop.permute.xlu0 %405 }
 0x3e0   :  { %1368 = vmatmul.mubr.msk.f32.vlgmr.msra.gmra.mxu1 %vm172_vm1, %v406_v45 }
 0x3e1   :  { %656 = vmatpush1.msra.mxu1 %v1697_v3  ;;  %703 = vmatprep.mubr.f32.mxu1 %v1629_v0 }
 0x3e2   :  { %657 = vmatprep.subr.mxu1 %v1699_v4 }
 0x3e3   :  { %658 = vmatpush1.msra.mxu1 %v1705_v6 }
 0x3e4   :  { %659 = vmatprep.subr.mxu1 %v1708_v7 }
 0x3e5   :  { %660 = vmatpush1.msra.mxu1 %v1714_v9 }
 0x3e6   :  { %661 = vmatprep.subr.mxu1 %v1720_v11 }
 0x3e7   :  { %662 = vmatpush1.msra.mxu1 %v1730_v15 }
 0x3e8   :  { %663 = vmatprep.subr.mxu1 %v1736_v17 }
 0x3e9   :  { %664 = vmatpush1.msra.mxu1 %v1739_v18 }
 0x3ea   :  { %665 = vmatprep.subr.mxu1 %v1748_v20 }
 0x3eb   :  { %666 = vmatpush1.msra.mxu1 %v1755_v22 }
 0x3ec   :  { %667 = vmatprep.subr.mxu1 %v1759_v23 }
 0x3ed   :  { %668 = vmatpush1.msra.mxu1 %v1763_v24 }
 0x3ee   :  { %669 = vmatprep.subr.mxu1 %v1767_v25 }
 0x3ef   :  { %670 = vmatpush1.msra.mxu1 %v1771_v26 }
 0x3f0   :  { %885 = vmatprep.subr.mxu1 %v1695_v2 }
 0x4a0   :  { %v475_v46 = vpop.f32.mrf.mxu1 }
 0x4a1   :  { %v482_v47 = vrot.slane %v475_v46, 6 }
 0x4a2   :  { %v477_v50 = vpop.f32.mrf.mxu1 }
 0x4a3   :  { %v486_v48 = vadd.f32 %v482_v47, %v1823_v31  ;;  %v483_v51 = vrot.slane %v477_v50, 6 }
 0x4a5   :  { %v1369_v49 = vmul.f32 -1.442695, %v486_v48  ;;  %v487_v52 = vadd.f32 %v483_v51, %v1830_v39 }
 0x4a7   :  { %1452 = vpow2.f32 %v1369_v49  ;;  %v1370_v61 = vmul.f32 -1.442695, %v487_v52 }
 0x4a8   :  { %1454 = vtanh.f32 %v487_v52 }
 0x4b4   :  { %v1453_v53 = vpop.eup %1452 }
 0x4b5   :  { %v494_v54 = vadd.f32 1.0, %v1453_v53  ;;  %v1455_v55 = vpop.eup %1454 }
 0x4b7   :  { %1456 = vrcp.f32 %v494_v54 }
 0x4b8   :  { %1458 = vpow2.f32 %v1370_v61 }
 0x4c4   :  { %v1457_v58 = vpop.eup %1456 }
 0x4c5   :  { %v505_v59 = vmul.f32 %v1457_v58, %v1455_v55  ;;  %v504_v60 = vmul.f32 %v1457_v58, %v502_v56  ;;  %v1459_v62 = vpop.eup %1458 }
 0x4c6   :  { %v495_v5 = vadd.f32 1.0, %v1459_v62 }
 0x4c7   :  { %507 = vrot.lane.b32.xlu1 %v505_v59, %s1630_s2 }
 0x4c8   :  { %1460 = vrcp.f32 %v495_v5 }
 0x4d5   :  { %v1461_v12 = vpop.eup %1460 }
 0x539   :  { %v508_v8 = vpop.permute.xlu1 %507 }
 0x53a   :  { %v510_v10 = vadd.f32 %v508_v8, %v504_v60 }
 0x53c   :  { %1462 = vtanh.f32 %v510_v10  ;;  %v617_v40 = vrot.slane %v510_v10, 7 }
 0x549   :  { %v1463_v13 = vpop.eup %1462 }
 0x54a   :  { %v1898_v14 = vmul.f32 %v1463_v13, %v1461_v12 }
 0x54c   :  { %v519_v16 = vrot.slane %v1898_v14, 2 }
 0x54e   :  { %520 = vrot.lane.b32.xlu0 %v519_v16, %s1630_s2 }
 0x5c0   :  { %v521_v19 = vpop.permute.xlu0 %520 }
 0x5c1   :  { %1371 = vmatmul.mubr.msk.f32.vlgmr.msra.gmra.mxu0 %vm172_vm1, %v521_v19 }
 0x5c2   :  { %771 = vmatpush1.msra.mxu0 %v1697_v3  ;;  %818 = vmatprep.mubr.f32.mxu0 %v1629_v0 }
 0x5c3   :  { %772 = vmatprep.subr.mxu0 %v1699_v4 }
 0x5c4   :  { %773 = vmatpush1.msra.mxu0 %v1705_v6 }
 0x5c5   :  { %774 = vmatprep.subr.mxu0 %v1708_v7 }
 0x5c6   :  { %775 = vmatpush1.msra.mxu0 %v1714_v9 }
 0x5c7   :  { %776 = vmatprep.subr.mxu0 %v1720_v11 }
 0x5c8   :  { %777 = vmatpush1.msra.mxu0 %v1730_v15 }
 0x5c9   :  { %778 = vmatprep.subr.mxu0 %v1736_v17 }
 0x5ca   :  { %779 = vmatpush1.msra.mxu0 %v1739_v18 }
 0x5cb   :  { %780 = vmatprep.subr.mxu0 %v1748_v20 }
 0x5cc   :  { %781 = vmatpush1.msra.mxu0 %v1755_v22 }
 0x5cd   :  { %782 = vmatprep.subr.mxu0 %v1759_v23 }
 0x5ce   :  { %783 = vmatpush1.msra.mxu0 %v1763_v24 }
 0x5cf   :  { %784 = vmatprep.subr.mxu0 %v1767_v25 }
 0x5d0   :  { %785 = vmatpush1.msra.mxu0 %v1771_v26 }
 0x5d1   :  { %1000 = vmatprep.subr.mxu0 %v1695_v2 }
 0x681   :  { %v590_v21 = vpop.f32.mrf.mxu0 }
 0x682   :  { %v597_v27 = vrot.slane %v590_v21, 5 }
 0x683   :  { %v592_v32 = vpop.f32.mrf.mxu0 }
 0x684   :  { %v601_v28 = vadd.f32 %v597_v27, %v1823_v31  ;;  %v598_v33 = vrot.slane %v592_v32, 5 }
 0x686   :  { %v1372_v30 = vmul.f32 -1.442695, %v601_v28  ;;  %v602_v34 = vadd.f32 %v598_v33, %v1830_v39 }
 0x688   :  { %1464 = vpow2.f32 %v1372_v30  ;;  %v1373_v45 = vmul.f32 -1.442695, %v602_v34 }
 0x689   :  { %1466 = vtanh.f32 %v602_v34 }
 0x695   :  { %v1465_v35 = vpop.eup %1464 }
 0x696   :  { %v609_v37 = vadd.f32 1.0, %v1465_v35  ;;  %v1467_v38 = vpop.eup %1466 }
 0x698   :  { %1468 = vrcp.f32 %v609_v37 }
 0x699   :  { %1470 = vpow2.f32 %v1373_v45 }
 0x6a5   :  { %v1469_v41 = vpop.eup %1468 }
 0x6a6   :  { %v620_v42 = vmul.f32 %v1469_v41, %v1467_v38  ;;  %v619_v44 = vmul.f32 %v1469_v41, %v617_v40  ;;  %v1471_v46 = vpop.eup %1470 }
 0x6a7   :  { %v610_v47 = vadd.f32 1.0, %v1471_v46 }
 0x6a8   :  { %622 = vrot.lane.b32.xlu1 %v620_v42, %s1630_s2 }
 0x6a9   :  { %1472 = vrcp.f32 %v610_v47 }
 0x6b6   :  { %v1473_v50 = vpop.eup %1472 }
 0x71a   :  { %v623_v48 = vpop.permute.xlu1 %622 }
 0x71b   :  { %v625_v49 = vadd.f32 %v623_v48, %v619_v44 }
 0x71d   :  { %1474 = vtanh.f32 %v625_v49  ;;  %v732_v12 = vrot.slane %v625_v49, 7 }
 0x72a   :  { %v1475_v51 = vpop.eup %1474 }
 0x72b   :  { %v1923_v52 = vmul.f32 %v1475_v51, %v1473_v50 }
 0x72d   :  { %v634_v53 = vrot.slane %v1923_v52, 3 }
 0x72f   :  { %635 = vrot.lane.b32.xlu0 %v634_v53, %s1630_s2 }
 0x7a1   :  { %v636_v54 = vpop.permute.xlu0 %635 }
 0x7a2   :  { %1374 = vmatmul.mubr.msk.f32.vlgmr.msra.gmra.mxu1 %vm172_vm1, %v636_v54 }
 0x7a3   :  { %886 = vmatpush1.msra.mxu1 %v1697_v3  ;;  %933 = vmatprep.mubr.f32.mxu1 %v1629_v0 }
 0x7a4   :  { %887 = vmatprep.subr.mxu1 %v1699_v4 }
 0x7a5   :  { %888 = vmatpush1.msra.mxu1 %v1705_v6 }
 0x7a6   :  { %889 = vmatprep.subr.mxu1 %v1708_v7 }
 0x7a7   :  { %890 = vmatpush1.msra.mxu1 %v1714_v9 }
 0x7a8   :  { %891 = vmatprep.subr.mxu1 %v1720_v11 }
 0x7a9   :  { %892 = vmatpush1.msra.mxu1 %v1730_v15 }
 0x7aa   :  { %893 = vmatprep.subr.mxu1 %v1736_v17 }
 0x7ab   :  { %894 = vmatpush1.msra.mxu1 %v1739_v18 }
 0x7ac   :  { %895 = vmatprep.subr.mxu1 %v1748_v20 }
 0x7ad   :  { %896 = vmatpush1.msra.mxu1 %v1755_v22 }
 0x7ae   :  { %897 = vmatprep.subr.mxu1 %v1759_v23 }
 0x7af   :  { %898 = vmatpush1.msra.mxu1 %v1763_v24 }
 0x7b0   :  { %899 = vmatprep.subr.mxu1 %v1767_v25 }
 0x7b1   :  { %900 = vmatpush1.msra.mxu1 %v1771_v26 }
 0x7b2   :  { %1115 = vmatprep.subr.mxu1 %v1695_v2 }
 0x862   :  { %v705_v55 = vpop.f32.mrf.mxu1 }
 0x863   :  { %v712_v56 = vrot.slane %v705_v55, 4 }
 0x864   :  { %v707_v60 = vpop.f32.mrf.mxu1 }
 0x865   :  { %v716_v58 = vadd.f32 %v712_v56, %v1823_v31  ;;  %v713_v61 = vrot.slane %v707_v60, 4 }
 0x867   :  { %v1375_v59 = vmul.f32 -1.442695, %v716_v58  ;;  %v717_v62 = vadd.f32 %v713_v61, %v1830_v39 }
 0x869   :  { %1476 = vpow2.f32 %v1375_v59  ;;  %v1376_v2 = vmul.f32 -1.442695, %v717_v62 }
 0x86a   :  { %1478 = vtanh.f32 %v717_v62 }
 0x876   :  { %v1477_v5 = vpop.eup %1476 }
 0x877   :  { %v724_v8 = vadd.f32 1.0, %v1477_v5  ;;  %v1479_v10 = vpop.eup %1478 }
 0x879   :  { %1480 = vrcp.f32 %v724_v8 }
 0x87a   :  { %1482 = vpow2.f32 %v1376_v2 }
 0x886   :  { %v1481_v13 = vpop.eup %1480 }
 0x887   :  { %v735_v16 = vmul.f32 %v1481_v13, %v1479_v10  ;;  %v734_v19 = vmul.f32 %v1481_v13, %v732_v12  ;;  %v1483_v21 = vpop.eup %1482 }
 0x888   :  { %v725_v27 = vadd.f32 1.0, %v1483_v21 }
 0x889   :  { %737 = vrot.lane.b32.xlu1 %v735_v16, %s1630_s2 }
 0x88a   :  { %1484 = vrcp.f32 %v725_v27 }
 0x897   :  { %v1485_v32 = vpop.eup %1484 }
 0x8fb   :  { %v738_v28 = vpop.permute.xlu1 %737 }
 0x8fc   :  { %v740_v30 = vadd.f32 %v738_v28, %v734_v19 }
 0x8fe   :  { %1486 = vtanh.f32 %v740_v30  ;;  %v847_v50 = vrot.slane %v740_v30, 7 }
 0x90b   :  { %v1487_v33 = vpop.eup %1486 }
 0x90c   :  { %v1948_v34 = vmul.f32 %v1487_v33, %v1485_v32 }
 0x90e   :  { %v749_v35 = vrot.slane %v1948_v34, 4 }
 0x910   :  { %750 = vrot.lane.b32.xlu0 %v749_v35, %s1630_s2 }
 0x982   :  { %v751_v37 = vpop.permute.xlu0 %750 }
 0x983   :  { %1377 = vmatmul.mubr.msk.f32.vlgmr.msra.gmra.mxu0 %vm172_vm1, %v751_v37 }
 0x984   :  { %1001 = vmatpush1.msra.mxu0 %v1697_v3  ;;  %1048 = vmatprep.mubr.f32.mxu0 %v1629_v0 }
 0x985   :  { %1002 = vmatprep.subr.mxu0 %v1699_v4 }
 0x986   :  { %1003 = vmatpush1.msra.mxu0 %v1705_v6 }
 0x987   :  { %1004 = vmatprep.subr.mxu0 %v1708_v7 }
 0x988   :  { %1005 = vmatpush1.msra.mxu0 %v1714_v9 }
 0x989   :  { %1006 = vmatprep.subr.mxu0 %v1720_v11 }
 0x98a   :  { %1007 = vmatpush1.msra.mxu0 %v1730_v15 }
 0x98b   :  { %1008 = vmatprep.subr.mxu0 %v1736_v17 }
 0x98c   :  { %1009 = vmatpush1.msra.mxu0 %v1739_v18 }
 0x98d   :  { %1010 = vmatprep.subr.mxu0 %v1748_v20 }
 0x98e   :  { %1011 = vmatpush1.msra.mxu0 %v1755_v22 }
 0x98f   :  { %1012 = vmatprep.subr.mxu0 %v1759_v23 }
 0x990   :  { %1013 = vmatpush1.msra.mxu0 %v1763_v24 }
 0x991   :  { %1014 = vmatprep.subr.mxu0 %v1767_v25 }
 0x992   :  { %1015 = vmatpush1.msra.mxu0 %v1771_v26 }
 0x993   :  { %1400 = vmatprep.subr.mxu0 %v1629_v0 }
 0xa43   :  { %v820_v38 = vpop.f32.mrf.mxu0 }
 0xa44   :  { %v827_v40 = vrot.slane %v820_v38, 3 }
 0xa45   :  { %v822_v44 = vpop.f32.mrf.mxu0 }
 0xa46   :  { %v831_v41 = vadd.f32 %v827_v40, %v1823_v31  ;;  %v828_v45 = vrot.slane %v822_v44, 3 }
 0xa48   :  { %v1378_v42 = vmul.f32 -1.442695, %v831_v41  ;;  %v832_v46 = vadd.f32 %v828_v45, %v1830_v39 }
 0xa4a   :  { %1488 = vpow2.f32 %v1378_v42  ;;  %v1379_v55 = vmul.f32 -1.442695, %v832_v46 }
 0xa4b   :  { %1490 = vtanh.f32 %v832_v46 }
 0xa57   :  { %v1489_v47 = vpop.eup %1488 }
 0xa58   :  { %v839_v48 = vadd.f32 1.0, %v1489_v47  ;;  %v1491_v49 = vpop.eup %1490 }
 0xa5a   :  { %1492 = vrcp.f32 %v839_v48 }
 0xa5b   :  { %1494 = vpow2.f32 %v1379_v55 }
 0xa67   :  { %v1493_v51 = vpop.eup %1492 }
 0xa68   :  { %v850_v53 = vmul.f32 %v1493_v51, %v1491_v49  ;;  %v849_v54 = vmul.f32 %v1493_v51, %v847_v50  ;;  %v1495_v56 = vpop.eup %1494 }
 0xa69   :  { %v840_v58 = vadd.f32 1.0, %v1495_v56 }
 0xa6a   :  { %852 = vrot.lane.b32.xlu1 %v850_v53, %s1630_s2 }
 0xa6b   :  { %1496 = vrcp.f32 %v840_v58 }
 0xa78   :  { %v1497_v61 = vpop.eup %1496 }
 0xadc   :  { %v853_v59 = vpop.permute.xlu1 %852 }
 0xadd   :  { %v855_v60 = vadd.f32 %v853_v59, %v849_v54 }
 0xadf   :  { %1498 = vtanh.f32 %v855_v60 }
 0xaec   :  { %v1499_v62 = vpop.eup %1498 }
 0xaed   :  { %v1973_v5 = vmul.f32 %v1499_v62, %v1497_v61  ;;  %v146_v62 = vadd.f32 %v1866_v63, %v1820_v29  ;;  %v1221_v29 = vld [vmem:[%s2102_s6 + $0x38] sm:$0xff] }
 0xaef   :  { %v864_v8 = vrot.slane %v1973_v5, 5 }
 0xaf1   :  { %865 = vrot.lane.b32.xlu0 %v864_v8, %s1630_s2 }
 0xb63   :  { %v866_v10 = vpop.permute.xlu0 %865 }
 0xb64   :  { %1380 = vmatmul.mubr.msk.f32.vlgmr.msra.gmra.mxu1 %vm172_vm1, %v866_v10 }
 0xb65   :  { %1116 = vmatpush1.msra.mxu1 %v1697_v3  ;;  %1163 = vmatprep.mubr.f32.mxu1 %v1629_v0 }
 0xb66   :  { %1117 = vmatprep.subr.mxu1 %v1699_v4 }
 0xb67   :  { %1118 = vmatpush1.msra.mxu1 %v1705_v6 }
 0xb68   :  { %1119 = vmatprep.subr.mxu1 %v1708_v7 }
 0xb69   :  { %1120 = vmatpush1.msra.mxu1 %v1714_v9 }
 0xb6a   :  { %1121 = vmatprep.subr.mxu1 %v1720_v11 }
 0xb6b   :  { %1122 = vmatpush1.msra.mxu1 %v1730_v15 }
 0xb6c   :  { %1123 = vmatprep.subr.mxu1 %v1736_v17 }
 0xb6d   :  { %1124 = vmatpush1.msra.mxu1 %v1739_v18 }
 0xb6e   :  { %1125 = vmatprep.subr.mxu1 %v1748_v20 }
 0xb6f   :  { %1126 = vmatpush1.msra.mxu1 %v1755_v22  ;;  %v962_v22 = vrot.slane %v855_v60, 7 }
 0xb70   :  { %1127 = vmatprep.subr.mxu1 %v1759_v23 }
 0xb71   :  { %1128 = vmatpush1.msra.mxu1 %v1763_v24 }
 0xb72   :  { %1129 = vmatprep.subr.mxu1 %v1767_v25 }
 0xb73   :  { %1130 = vmatpush1.msra.mxu1 %v1771_v26 }
 0xc24   :  { %v935_v3 = vpop.f32.mrf.mxu1 }
 0xc25   :  { %v942_v4 = vrot.slane %v935_v3, 2 }
 0xc26   :  { %v937_v9 = vpop.f32.mrf.mxu1 }
 0xc27   :  { %v946_v6 = vadd.f32 %v942_v4, %v1823_v31  ;;  %v943_v11 = vrot.slane %v937_v9, 2 }
 0xc29   :  { %v1381_v7 = vmul.f32 -1.442695, %v946_v6  ;;  %v947_v15 = vadd.f32 %v943_v11, %v1830_v39 }
 0xc2b   :  { %1500 = vpow2.f32 %v1381_v7  ;;  %v1382_v26 = vmul.f32 -1.442695, %v947_v15 }
 0xc2c   :  { %1502 = vtanh.f32 %v947_v15 }
 0xc38   :  { %v1501_v17 = vpop.eup %1500 }
 0xc39   :  { %v954_v18 = vadd.f32 1.0, %v1501_v17  ;;  %v1503_v20 = vpop.eup %1502 }
 0xc3b   :  { %1504 = vrcp.f32 %v954_v18 }
 0xc3c   :  { %1506 = vpow2.f32 %v1382_v26  ;;  %v1216_v26 = vld [vmem:[%s2102_s6 + $0x10] sm:$0xff] }
 0xc48   :  { %v1505_v23 = vpop.eup %1504 }
 0xc49   :  { %v965_v24 = vmul.f32 %v1505_v23, %v1503_v20  ;;  %v964_v25 = vmul.f32 %v1505_v23, %v962_v22  ;;  %v1507_v12 = vpop.eup %1506  ;;  %v1219_v22 = vld [vmem:[%s2102_s6 + $0x28] sm:$0xff]  ;;  %v1218_v23 = vld [vmem:[%s2102_s6 + $0x20] sm:$0xff] }
 0xc4a   :  { %v955_v13 = vadd.f32 1.0, %v1507_v12 }
 0xc4b   :  { %967 = vrot.lane.b32.xlu1 %v965_v24, %s1630_s2 }
 0xc4c   :  { %1508 = vrcp.f32 %v955_v13  ;;  %v1215_v13 = vld [vmem:[%s2102_s6 + $0x8] sm:$0xff] }
 0xc59   :  { %v1509_v2 = vpop.eup %1508 }
 0xcbd   :  { %v968_v16 = vpop.permute.xlu1 %967 }
 0xcbe   :  { %v970_v19 = vadd.f32 %v968_v16, %v964_v25  ;;  %v1217_v25 = vld [vmem:[%s2102_s6 + $0x18] sm:$0xff] }
 0xcc0   :  { %1510 = vtanh.f32 %v970_v19  ;;  %v1077_v46 = vrot.slane %v970_v19, 7  ;;  %v1214_v19 = vld [vmem:[%s2102_s6] sm:$0xff] }
 0xccd   :  { %v1511_v21 = vpop.eup %1510 }
 0xcce   :  { %v1997_v27 = vmul.f32 %v1511_v21, %v1509_v2 }
 0xcd0   :  { %v979_v28 = vrot.slane %v1997_v27, 6 }
 0xcd2   :  { %980 = vrot.lane.b32.xlu0 %v979_v28, %s1630_s2 }
 0xd44   :  { %v981_v30 = vpop.permute.xlu0 %980 }
 0xd45   :  { %1383 = vmatmul.mubr.msk.f32.vlgmr.msra.gmra.mxu0 %vm172_vm1, %v981_v30 }
 0xd46   :  { %1401 = vmatpush3.msra.mxu0 %v1221_v29  ;;  %1416 = vmatprep.mubr.msk.f32.mxu0 %vm1631_vm8, %v1629_v0 }
 0xd47   :  { %1402 = vmatprep.subr.mxu0 %v1629_v0 }
 0xe05   :  { %v1050_v32 = vpop.f32.mrf.mxu0 }
 0xe06   :  { %v1057_v33 = vrot.slane %v1050_v32, 1 }
 0xe07   :  { %v1052_v38 = vpop.f32.mrf.mxu0 }
 0xe08   :  { %v1061_v35 = vadd.f32 %v1057_v33, %v1823_v31  ;;  %v1058_v40 = vrot.slane %v1052_v38, 1 }
 0xe0a   :  { %v1384_v37 = vmul.f32 -1.442695, %v1061_v35  ;;  %v1062_v41 = vadd.f32 %v1058_v40, %v1830_v39 }
 0xe0c   :  { %1512 = vpow2.f32 %v1384_v37  ;;  %v1385_v50 = vmul.f32 -1.442695, %v1062_v41 }
 0xe0d   :  { %1514 = vtanh.f32 %v1062_v41 }
 0xe19   :  { %v1513_v42 = vpop.eup %1512 }
 0xe1a   :  { %v1069_v44 = vadd.f32 1.0, %v1513_v42  ;;  %v1515_v45 = vpop.eup %1514 }
 0xe1c   :  { %1516 = vrcp.f32 %v1069_v44 }
 0xe1d   :  { %1518 = vpow2.f32 %v1385_v50 }
 0xe29   :  { %v1517_v47 = vpop.eup %1516 }
 0xe2a   :  { %v1080_v48 = vmul.f32 %v1517_v47, %v1515_v45  ;;  %v1079_v49 = vmul.f32 %v1517_v47, %v1077_v46  ;;  %v1519_v31 = vpop.eup %1518 }
 0xe2b   :  { %v1070_v51 = vadd.f32 1.0, %v1519_v31 }
 0xe2c   :  { %1082 = vrot.lane.b32.xlu1 %v1080_v48, %s1630_s2 }
 0xe2d   :  { %1520 = vrcp.f32 %v1070_v51 }
 0xe3a   :  { %v1521_v39 = vpop.eup %1520 }
 0xe9e   :  { %v1083_v53 = vpop.permute.xlu1 %1082 }
 0xe9f   :  { %v2005_v54 = vadd.f32 %v1083_v53, %v1079_v49 }
 0xea1   :  { %1522 = vtanh.f32 %v2005_v54 }
 0xeae   :  { %v1523_v55 = vpop.eup %1522 }
 0xeaf   :  { %v1087_v56 = vmul.f32 %v1523_v55, %v1521_v39 }
 0xeb1   :  { %v1094_v58 = vrot.slane %v1087_v56, 7 }
 0xeb3   :  { %1095 = vrot.lane.b32.xlu0 %v1094_v58, %s1630_s2 }
 0xeb7   :  { %514 = vrot.lane.b32.xlu0 %v1898_v14, %s1630_s2 }
 0xebb   :  { %744 = vrot.lane.b32.xlu0 %v1948_v34, %s1630_s2  ;;  %v148_v34 = vadd.f32 %v1868_v1, %v1827_v36  ;;  %v1220_v36 = vld [vmem:[%s2102_s6 + $0x30] sm:$0xff] }
 0xebc   :  { %1403 = vmatpush3.msra.mxu0 %v1220_v36 }
 0xebd   :  { %1404 = vmatprep.subr.mxu0 %v1629_v0 }
 0xebe   :  { %1405 = vmatpush3.msra.mxu0 %v1219_v22 }
 0xebf   :  { %1406 = vmatprep.subr.mxu0 %v1629_v0 }
 0xec0   :  { %1407 = vmatpush3.msra.mxu0 %v1218_v23 }
 0xec1   :  { %1408 = vmatprep.subr.mxu0 %v1629_v0 }
 0xec2   :  { %1409 = vmatpush3.msra.mxu0 %v1217_v25 }
 0xec3   :  { %1410 = vmatprep.subr.mxu0 %v1629_v0 }
 0xec4   :  { %1411 = vmatpush3.msra.mxu0 %v1216_v26 }
 0xec5   :  { %1412 = vmatprep.subr.mxu0 %v1629_v0 }
 0xec6   :  { %1413 = vmatpush3.msra.mxu0 %v1215_v13 }
 0xec7   :  { %1414 = vmatprep.subr.mxu0 %v1629_v0 }
 0xec8   :  { %1415 = vmatpush3.msra.mxu0 %v1214_v19 }
 0xf25   :  { %v2013_v59 = vpop.permute.xlu0 %1095 }
 0xf26   :  { %1386 = vmatmul.mubr.msk.f32.vlgmr.msra.gmra.mxu1 %vm172_vm1, %v2013_v59 }
 0xf29   :  { %v515_v60 = vpop.permute.xlu0 %514 }
 0xf2a   :  { %518 = vst.msk [vmem:[#allocation2 - $0x1] sm:$0x4] %vm517_vm3, %v515_v60 }
 0xf2d   :  { %v745_v61 = vpop.permute.xlu0 %744 }
 0xf2e   :  { %748 = vst.msk [vmem:[#allocation2 - $0x1] sm:$0x10] %vm747_vm4, %v745_v61 }
 0xfe6   :  { %v1165_v8 = vpop.f32.mrf.mxu1 }
 0xfe7   :  { %v1170_v10 = vadd.f32 %v1165_v8, %v146_v62 }
 0xfe8   :  { %v1167_v3 = vpop.f32.mrf.mxu1 }
 0xfe9   :  { %v1387_v14 = vmul.f32 -1.442695, %v1170_v10  ;;  %v1171_v4 = vadd.f32 %v1167_v3, %v148_v34 }
 0xfeb   :  { %1524 = vpow2.f32 %v1387_v14  ;;  %v1388_v63 = vmul.f32 -1.442695, %v1171_v4 }
 0xfec   :  { %1526 = vtanh.f32 %v1171_v4 }
 0xff8   :  { %v1525_v6 = vpop.eup %1524 }
 0xff9   :  { %v1178_v7 = vadd.f32 1.0, %v1525_v6  ;;  %v1527_v9 = vpop.eup %1526 }
 0xffb   :  { %1528 = vrcp.f32 %v1178_v7 }
 0xffc   :  { %1530 = vpow2.f32 %v1388_v63 }
0x1008   :  { %v1529_v11 = vpop.eup %1528 }
0x1009   :  { %v1189_v15 = vmul.f32 %v1529_v11, %v1527_v9  ;;  %v1531_v1 = vpop.eup %1530 }
0x100b   :  { %1191 = vrot.lane.b32.xlu1 %v1189_v15, %s1630_s2 }
0x100f   :  { %399 = vrot.lane.b32.xlu1 %v1873_v43, %s1630_s2  ;;  %v1186_v43 = vrot.slane %v2005_v54, 7 }
0x1011   :  { %v1188_v17 = vmul.f32 %v1529_v11, %v1186_v43 }
0x1013   :  { %629 = vrot.lane.b32.xlu1 %v1923_v52, %s1630_s2  ;;  %v1179_v52 = vadd.f32 1.0, %v1531_v1 }
0x1015   :  { %1532 = vrcp.f32 %v1179_v52 }
0x1017   :  { %859 = vrot.lane.b32.xlu1 %v1973_v5, %s1630_s2 }
0x101b   :  { %1089 = vrot.lane.b32.xlu1 %v1087_v56, %s1630_s2 }
0x1022   :  { %v1533_v16 = vpop.eup %1532 }
0x107d   :  { %v1192_v18 = vpop.permute.xlu1 %1191 }
0x107e   :  { %v1194_v20 = vadd.f32 %v1192_v18, %v1188_v17 }
0x1080   :  { %1534 = vtanh.f32 %v1194_v20 }
0x1081   :  { %v400_v5 = vpop.permute.xlu1 %399 }
0x1082   :  { %403 = vst.msk [vmem:[#allocation2 - $0x1] sm:$0x2] %vm402_vm5, %v400_v5 }
0x1085   :  { %v630_v24 = vpop.permute.xlu1 %629 }
0x1086   :  { %633 = vst.msk [vmem:[#allocation2 - $0x1] sm:$0x8] %vm632_vm6, %v630_v24 }
0x1089   :  { %v860_v12 = vpop.permute.xlu1 %859 }
0x108a   :  { %863 = vst.msk [vmem:[#allocation2 - $0x1] sm:$0x20] %vm862_vm7, %v860_v12 }
0x108d   :  { %v1535_v2 = vpop.eup %1534  ;;  %v1090_v21 = vpop.permute.xlu1 %1089 }
0x108e   :  { %1093 = vst.msk [vmem:[#allocation2 - $0x1] sm:$0x80] %vm1092_vm9, %v1090_v21  ;;  %v1196_v28 = vmul.f32 %v1535_v2, %v1533_v16 }
0x1090   :  { %1206 = vrot.lane.b32.xlu0 %v1196_v28, %s1630_s2 }
0x1094   :  { %974 = vrot.lane.b32.xlu0 %v1997_v27, %s1630_s2  ;;  %v1389_v27 = vld [vmem:[%s2103_s7] ss:$0 sm:$0xff]  ;;  %s1632_s7 = smov [#allocation7]  }
0x1095   :  { %s1334_s3 = sshll.u32 %s1632_s7, 4  ;;  %s1335_s3 = int_to_ptr.vmem [resolvable:$true] %s1334_s3 }
0x1096   :  { %s1560_s29 = scalar_lea.vmem %s1335_s3, 16  ;;  %s1564_s30 = scalar_lea.vmem %s1335_s3, 32 }
0x1097   :  { %p1561_p5 = scmp.ne.s32.totalorder %s1335_s3, %s1560_s29  ;;  %p1565_p6 = scmp.lt.s32.totalorder %s1335_s3, %s1335_s3 }
0x1098   :  { %p1566_p7 = scmp.lt.s32.totalorder %s1564_s30, %s1560_s29 }
0x109a   :  { %p1567_p8 = por %p1566_p7, %p1565_p6 }
0x109c   :  { %p1568_p9 = pnand %p1567_p8, %p1561_p5 }
0x1102   :  { %v1207_v30 = vpop.permute.xlu0 %1206 }
0x1103   :  { %v1210_v32 = vsel %vm169_vm10, %v1207_v30, %v2013_v59 }
0x1104   :  { %1212 = vst.msk [vmem:[#allocation2 + $0x7] sm:$0x1] %vm1211_vm11, %v1210_v32  ;;  %1316 = vst.msk [vmem:[#allocation7] sm:$0x1] %vm1211_vm11, %v1210_v32 }
0x1106   :  { %v975_v0 = vpop.permute.xlu0 %974 }
0x1107   :  { %978 = vst.msk [vmem:[#allocation2 - $0x1] sm:$0x40] %vm977_vm12, %v975_v0 }
0x110e   :  { %v1213_v33 = vld [vmem:[#allocation2] sm:$0xff] }
0x110f   :  { %1417 = vmatmul.mubr.msk.f32.vlgmr.msra.gmra.mxu0 %vm172_vm1, %v1213_v33 }
0x11cf   :  { %v1298_v35 = vpop.f32.mrf.mxu0 }
0x11d0   :  { %v1299_v37 = vadd.f32 %v1389_v27, %v1298_v35 }
0x11d1   :  { %v1418_v38 = vpop.f32.mrf.mxu0 }
0x11d2   :  { %v1303_v40 = vsel %vm1302_vm13, %v1299_v37, -inf }
0x11d3   :  { %1304 = vmax.xlane.f32.xlu0 %v1303_v40 }
0x11e9   :  { %1198 = vrot.lane.b32.xlu0 %v1194_v20, %s1630_s2 }
0x125c   :  { %v1305_v41 = vpop.xlane.xlu0 %1304 }
0x125d   :  { %v1306_v42 = vsub.f32 %v1299_v37, %v1305_v41 }
0x125f   :  { %v1307_v44 = vmul.f32 1.442695, %v1306_v42 }
0x1261   :  { %1536 = vpow2.f32 %v1307_v44 }
0x126e   :  { %v1537_v45 = vpop.eup %1536 }
0x126f   :  { %v1309_v46 = vsel %vm1302_vm13, %v1537_v45, 0.0 }
0x1270   :  { %1310 = vadd.xlane.f32.xlu1 %v1309_v46 }
0x1281   :  { %1201 = vrot.lane.b32.xlu1 %v1186_v43, %s1630_s2 }
0x1282   :  { %1571 = shalt.err (!%p1568_p9)
}
0x1283   :  { %1337 = dma.vmem_to_hbm [thread:$0]  %s1335_s3, 16, %s2105_s9, [#allocation8]   ;;  %v1199_v48 = vpop.permute.xlu0 %1198 }
0x1284   :  { %s1633_s12 = smov [#allocation9]  }
0x1285   :  { %s1344_s4 = sshll.u32 %s1633_s12, 4  ;;  %s1345_s4 = int_to_ptr.vmem [resolvable:$true] %s1344_s4 }
0x1286   :  { %s1580_s2 = scalar_lea.vmem %s1345_s4, 16  ;;  %s1584_s13 = scalar_lea.vmem %s1345_s4, 32 }
0x1287   :  { %p1581_p10 = scmp.ne.s32.totalorder %s1345_s4, %s1580_s2  ;;  %p1585_p11 = scmp.lt.s32.totalorder %s1345_s4, %s1345_s4 }
0x1288   :  { %p1586_p12 = scmp.lt.s32.totalorder %s1584_s13, %s1580_s2 }
0x128a   :  { %p1587_p13 = por %p1586_p12, %p1585_p11 }
0x128c   :  { %p1588_p0 = pnand %p1587_p13, %p1581_p10 }
0x12f9   :  { %v1311_v47 = vpop.xlane.xlu1 %1310 }
0x12fa   :  { %1538 = vlog2.f32 %v1311_v47 }
0x12fd   :  { %v1202_v49 = vpop.permute.xlu1 %1201 }
0x12fe   :  { %v1204_v50 = vsel %vm169_vm10, %v1199_v48, %v1202_v49 }
0x12ff   :  { %1317 = vst.msk [vmem:[#allocation9] sm:$0x1] %vm1211_vm11, %v1204_v50 }
0x1300   :  { %1591 = shalt.err (!%p1588_p0)
}
0x1301   :  { %1347 = dma.vmem_to_hbm [thread:$0]  %s1345_s4, 16, %s2106_s10, [#allocation8]  }
0x1302   :  { %s1634_s14 = smov [#allocation6]  }
0x1303   :  { %s1324_s15 = sshll.u32 %s1634_s14, 4  ;;  %s1325_s15 = int_to_ptr.vmem [resolvable:$true] %s1324_s15 }
0x1304   :  { %s1600_s16 = scalar_lea.vmem %s1325_s15, 128  ;;  %p1605_p2 = scmp.lt.s32.totalorder %s1325_s15, %s1325_s15 }
0x1305   :  { %p1601_p1 = scmp.ne.s32.totalorder %s1325_s15, %s1600_s16  ;;  %p1606_p3 = scmp.lt.s32.totalorder %s1600_s16, %s1600_s16 }
0x1307   :  { %v1539_v31 = vpop.eup %1538  ;;  %p1607_p4 = por %p1606_p3, %p1605_p2 }
0x1308   :  { %v1313_v51 = vmul.f32 0.6931472, %v1539_v31 }
0x1309   :  { %p1608_p5 = pnand %p1607_p4, %p1601_p1 }
0x130a   :  { %v1314_v57 = vsub.f32 %v1306_v42, %v1313_v51 }
0x130c   :  { %1315 = vst.msk [vmem:[#allocation6] sm:$0xff] %vm1302_vm13, %v1314_v57 }
0x130d   :  { %1611 = shalt.err (!%p1608_p5)
}
0x130e   :  { %1327 = dma.vmem_to_hbm [thread:$0]  %s1325_s15, 128, %s2104_s8, [#allocation5]  }
0x130f   :  { %1622 = dma.done.wait [#allocation5], 128  }
0x1310   :  { %1623 = vsyncadd [#allocation5], 4294967168 }
0x1311   :  { %1624 = dma.done.wait [#allocation8], 32  }
0x1312   :  { %1625 = vsyncadd [#allocation8], 4294967264 }
0x1313   :  { %1357 = vsyncpa [#allocation4], 1 }
0x1314   :  { %1358 = vsyncpa [#allocation5], 1 }
0x1315   :  { %1359 = vsyncpa [#allocation8], 1 }

</bundles_post_ra>
